<compile_context>
chip_gen: v5e
topology: v5e:2x2
jax: 0.10.0
libtpu: 0.0.40
codegen_flags: <defaults>
</compile_context>

<pallas_src>
import functools

import jax
import jax.numpy as jnp
from jax.experimental import pallas as pl
from jax.experimental.pallas import tpu as pltpu


def _acd_kernel(thr_ref, h_ref, v_ref, x_ref, o_ref, *, use_abs):
    h = h_ref[...]
    v = v_ref[...]
    x = x_ref[...]
    thr = thr_ref[0]  # SMEM scalar
    if use_abs:
        # VPU abs frees the single EUP slot (v7x).  Differs from sqrt(h*h)
        # only where h*h / v*v over- or under-flow in float32.
        cos1 = jnp.abs(h) * jnp.abs(v)
    else:
        # Exact reference formula; EUP sqrt/div hide under HBM DMA on v5e/v6e.
        cos1 = jnp.sqrt(h * h) * jnp.sqrt(v * v)
    cosin1 = (h * v) / cos1          # 0/0 -> NaN; NaN > thr == False (matches torch.where)
    y = jnp.where(cosin1 > thr, 1.0, 0.0).astype(x.dtype)
    # y * x (not where(mask, x, 0)) so NaN/Inf in x propagate like the reference.
    o_ref[...] = y * x


def _round_up(n, m):
    return ((n + m - 1) // m) * m


def _chip_defaults():
    """Per-generation tiling defaults.  Safe fallback for unknown chips."""
    try:
        kind = jax.devices()[0].device_kind.lower()
    except Exception:
        kind = ""
    if "v7" in kind:
        # 4 MiB blocks; 3 in + 1 out, double-buffered = 32 MiB -> raise scoped VMEM.
        return dict(block_bytes=4 << 20, vmem_limit_bytes=40 << 20,
                    use_abs=True, two_tc=True)
    if "v6" in kind:
        # 2 MiB blocks -> 16 MiB double-buffered, fits the 32 MiB default.
        return dict(block_bytes=2 << 20, vmem_limit_bytes=None,
                    use_abs=False, two_tc=False)
    # v5e / unknown: 1 MiB blocks -> 8 MiB double-buffered, fits 16 MiB default.
    return dict(block_bytes=1 << 20, vmem_limit_bytes=None,
                use_abs=False, two_tc=False)


def acd_forward(h1, v1, x1, thr):
    """ACD forward. h1, v1, x1: float arrays of identical shape (e.g. NCHW)."""
    assert h1.shape == v1.shape == x1.shape
    assert h1.dtype == v1.dtype == x1.dtype
    orig_shape = h1.shape
    dtype = h1.dtype
    itemsize = jnp.dtype(dtype).itemsize
    total = h1.size

    cfg = _chip_defaults()

    # --- choose a lane width (multiple of 128) that divides the element count ---
    lanes = None
    for cand in (512, 256, 128):
        if total % cand == 0:
            lanes = cand
            break

    if lanes is None:
        # Rare irregular totals: minimal tail pad to a multiple of 128.
        # TODO(synk): replace with an in-kernel iota mask driven by a
        # scalar-prefetched `total` to avoid the extra HBM pass entirely.
        lanes = 128
        padded_total = _round_up(total, lanes)
    else:
        padded_total = total

    rows = padded_total // lanes

    def to2d(a):
        flat = a.reshape(-1)
        if padded_total != total:
            flat = jnp.pad(flat, (0, padded_total - total))
        return flat.reshape(rows, lanes)

    h2, v2, x2 = to2d(h1), to2d(v1), to2d(x1)

    # --- tile rows: target block_bytes per chip, multiple of 8 sublanes ---
    tile_cap = max(8, (cfg["block_bytes"] // (lanes * itemsize)) // 8 * 8)
    tile_rows = min(tile_cap, rows)
    if cfg["two_tc"] and rows >= 16:
        # Guarantee >= 2 grid steps so the "parallel" axis splits across both
        # v7x TensorCores.
        half = max(8, _round_up(-(-rows // 2), 8))
        tile_rows = min(tile_rows, half)
    # (8,128) rule: tile_rows is either a multiple of 8 or equals the full dim.

    grid = (pl.cdiv(rows, tile_rows),)  # ragged last block is masked by Pallas
    spec = pl.BlockSpec((tile_rows, lanes), lambda i: (i, 0))
    thr_spec = pl.BlockSpec(memory_space=pltpu.MemorySpace.SMEM)

    cp_kwargs = dict(dimension_semantics=("parallel",))
    if cfg["vmem_limit_bytes"] is not None:
        cp_kwargs["vmem_limit_bytes"] = cfg["vmem_limit_bytes"]

    thr_arr = jnp.asarray(thr, dtype=jnp.float32).reshape(1)

    # TODO(synk): if the caller can donate x1, add input_output_aliases to drop
    # the separate output allocation (footprint-only win).
    out2 = pl.pallas_call(
        functools.partial(_acd_kernel, use_abs=cfg["use_abs"]),
        out_shape=jax.ShapeDtypeStruct((rows, lanes), dtype),
        grid=grid,
        in_specs=[thr_spec, spec, spec, spec],
        out_specs=spec,
        compiler_params=pltpu.CompilerParams(**cp_kwargs),
    )(thr_arr, h2, v2, x2)

    out_flat = out2.reshape(-1)
    if padded_total != total:
        out_flat = out_flat[:total]
    return out_flat.reshape(orig_shape)


def acd_reference(h1, v1, x1, thr):
    """Pure-JAX translation of the PyTorch forward."""
    cos1 = jnp.sqrt(h1 * h1) * jnp.sqrt(v1 * v1)
    cosin1 = (h1 * v1) / cos1
    y = jnp.where(cosin1 > thr, jnp.ones_like(x1), jnp.zeros_like(x1))
    return y * x1


if __name__ == "__main__":
    # Module "parameters": units is unused in forward; Thr is a scalar threshold.
    units = 32
    thr = 0.0

    key = jax.random.PRNGKey(0)
    k1, k2, k3 = jax.random.split(key, 3)
    shape = (2, 4, 16, 16)  # NCHW
    h1 = jax.random.normal(k1, shape, dtype=jnp.float32)
    v1 = jax.random.normal(k2, shape, dtype=jnp.float32)
    x1 = jax.random.normal(k3, shape, dtype=jnp.float32)

    out = acd_forward(h1, v1, x1, thr)
    out = jax.block_until_ready(out)

    ref = acd_reference(h1, v1, x1, thr)
    assert out.shape == shape
    assert bool(jnp.allclose(out, ref, atol=1e-6, equal_nan=True))

    print("KERNEL_OK")
</pallas_src>

<mosaic_0001>
module attributes {stable_mosaic.version = 11 : i64} {
  func.func @_acd_kernel(%arg0: i32, %arg1: memref<1xf32, #tpu.memory_space<smem>>, %arg2: memref<4x512xf32, #tpu.memory_space<vmem>>, %arg3: memref<4x512xf32, #tpu.memory_space<vmem>>, %arg4: memref<4x512xf32, #tpu.memory_space<vmem>>, %arg5: memref<4x512xf32, #tpu.memory_space<vmem>>) attributes {dimension_semantics = [#tpu.dimension_semantics<parallel>], iteration_bounds = array<i64: 1>, scalar_prefetch = 0 : i64, scratch_operands = 0 : i64, tpu.core_type = #tpu.core_type<tc>, window_params = [{transform_indices = @transform_0, window_bounds = array<i64: 1>}, {transform_indices = @transform_1, window_bounds = array<i64: 4, 512>}, {transform_indices = @transform_2, window_bounds = array<i64: 4, 512>}, {transform_indices = @transform_3, window_bounds = array<i64: 4, 512>}, {transform_indices = @transform_4, window_bounds = array<i64: 4, 512>}]} {
    %c0 = arith.constant 0 : index
    %c0_0 = arith.constant 0 : index
    %0 = vector.load %arg2[%c0, %c0_0] : memref<4x512xf32, #tpu.memory_space<vmem>>, vector<4x512xf32>
    %c0_1 = arith.constant 0 : index
    %c0_2 = arith.constant 0 : index
    %1 = vector.load %arg3[%c0_1, %c0_2] : memref<4x512xf32, #tpu.memory_space<vmem>>, vector<4x512xf32>
    %c0_3 = arith.constant 0 : index
    %c0_4 = arith.constant 0 : index
    %2 = vector.load %arg4[%c0_3, %c0_4] : memref<4x512xf32, #tpu.memory_space<vmem>>, vector<4x512xf32>
    %c0_5 = arith.constant 0 : index
    %3 = memref.load %arg1[%c0_5] : memref<1xf32, #tpu.memory_space<smem>>
    %4 = arith.mulf %0, %0 : vector<4x512xf32>
    %5 = math.sqrt %4 : vector<4x512xf32>
    %6 = arith.mulf %1, %1 : vector<4x512xf32>
    %7 = math.sqrt %6 : vector<4x512xf32>
    %8 = arith.mulf %5, %7 : vector<4x512xf32>
    %9 = arith.mulf %0, %1 : vector<4x512xf32>
    %10 = arith.divf %9, %8 : vector<4x512xf32>
    %11 = vector.broadcast %3 : f32 to vector<4x512xf32>
    %12 = arith.cmpf ogt, %10, %11 : vector<4x512xf32>
    %cst = arith.constant 1.000000e+00 : f32
    %cst_6 = arith.constant 0.000000e+00 : f32
    %13 = vector.broadcast %cst : f32 to vector<4x512xf32>
    %14 = vector.broadcast %cst_6 : f32 to vector<4x512xf32>
    %15 = arith.select %12, %13, %14 : vector<4x512xi1>, vector<4x512xf32>
    %16 = arith.mulf %15, %2 : vector<4x512xf32>
    %c0_7 = arith.constant 0 : index
    %c0_8 = arith.constant 0 : index
    %17 = vector.load %arg5[%c0_7, %c0_8] : memref<4x512xf32, #tpu.memory_space<vmem>>, vector<4x512xf32>
    tpu.vector_store %arg5[%c0_7, %c0_8], %16 {strides = array<i32>} : memref<4x512xf32, #tpu.memory_space<vmem>>, vector<4x512xf32>,
    return
  }
  func.func @transform_0(%arg0: i32) -> i32 {
    %c0_i32 = arith.constant 0 : i32
    %c0_i32_0 = arith.constant 0 : i32
    return %c0_i32 : i32
  }
  func.func @transform_1(%arg0: i32) -> (i32, i32) {
    %c0_i32 = arith.constant 0 : i32
    %c0_i32_0 = arith.constant 0 : i32
    return %arg0, %c0_i32 : i32, i32
  }
  func.func @transform_2(%arg0: i32) -> (i32, i32) {
    %c0_i32 = arith.constant 0 : i32
    %c0_i32_0 = arith.constant 0 : i32
    return %arg0, %c0_i32 : i32, i32
  }
  func.func @transform_3(%arg0: i32) -> (i32, i32) {
    %c0_i32 = arith.constant 0 : i32
    %c0_i32_0 = arith.constant 0 : i32
    return %arg0, %c0_i32 : i32, i32
  }
  func.func @transform_4(%arg0: i32) -> (i32, i32) {
    %c0_i32 = arith.constant 0 : i32
    %c0_i32_0 = arith.constant 0 : i32
    return %arg0, %c0_i32 : i32, i32
  }
}

</mosaic_0001>

<bundles_post_ra>
// kernel: tpu_custom_call.1
= control target key start
LH: loop header
LB: loop body
LE: loop exit
PB: predicated region body
PF: predicated region fallthrough
CT: control target
= control target key end

     0   :  { %10 = vsyncpa [#allocation4], 0  ;;  %s368_s0 = inlined_call_operand.<no memory space> [shape: f32[1], index: 0, kind: input, shape index: {}]   ;;  %s369_s1 = inlined_call_operand.hbm [shape: f32[4,512], index: 1, kind: input, shape index: {}]   ;;  %s370_s2 = inlined_call_operand.hbm [shape: f32[4,512], index: 2, kind: input, shape index: {}]   ;;  %s371_s3 = inlined_call_operand.hbm [shape: f32[4,512], index: 3, kind: input, shape index: {}]   ;;  %s372_s4 = inlined_call_operand.hbm [shape: f32[4,512], index: 4, kind: output, shape index: {}]  }
   0x1   :  { %11 = vsyncpa [#allocation7], 0  ;;  %s31_s17 = sshll.u32 %s370_s2, 4  ;;  %s32_s17 = int_to_ptr.hbm [resolvable:$true] %s31_s17 }
   0x2   :  { %12 = vsyncpa [#allocation5], 0  ;;  %s299_s18 = smov [#allocation6]   ;;  %s20_s22 = sshll.u32 %s369_s1, 4  ;;  %s21_s22 = int_to_ptr.hbm [resolvable:$true] %s20_s22 }
   0x3   :  { %s33_s19 = sshll.u32 %s299_s18, 4  ;;  %s300_s23 = smov [#allocation3]   ;;  %s34_s19 = int_to_ptr.vmem [resolvable:$true] %s33_s19 }
   0x4   :  { %36 = dma.hbm_to_vmem [thread:$0]  %s32_s17, 256, %s34_s19, [#allocation7]  }
   0x5   :  { %s22_s24 = sshll.u32 %s300_s23, 4  ;;  %s42_s27 = sshll.u32 %s371_s3, 4  ;;  %s23_s24 = int_to_ptr.vmem [resolvable:$true] %s22_s24  ;;  %s43_s27 = int_to_ptr.hbm [resolvable:$true] %s42_s27 }
   0x6   :  { %25 = dma.hbm_to_vmem [thread:$0]  %s21_s22, 256, %s23_s24, [#allocation4]  }
   0x7   :  { %s301_s2 = smov [#allocation8]  }
   0x8   :  { %s44_s28 = sshll.u32 %s301_s2, 4  ;;  %s45_s28 = int_to_ptr.vmem [resolvable:$true] %s44_s28 }
   0x9   :  { %47 = dma.hbm_to_vmem [thread:$0]  %s43_s27, 256, %s45_s28, [#allocation7]  }
   0xa   :  { %293 = dma.done.wait [#allocation4], 256  }
   0xb   :  { %294 = vsyncadd [#allocation4], 4294967040 }
   0xc   :  { %295 = dma.done.wait [#allocation7], 512  }
   0xd   :  { %296 = vsyncadd [#allocation7], 4294966784  ;;  %v338_v0 = vld [vmem:[#allocation3] sm:$0xff]  ;;  %v340_v1 = vld [vmem:[#allocation6] sm:$0xff]  ;;  %s303_s29 = smov [#allocation9]   ;;  %s169_s6 = sshll.u32 %s372_s4, 4  ;;  %s170_s6 = int_to_ptr.hbm [resolvable:$true] %s169_s6 }
   0xe   :  { %v67_v2 = vmul.f32 %v338_v0, %v338_v0  ;;  %v93_v3 = vmul.f32 %v340_v1, %v340_v1  ;;  %v346_v4 = vld [vmem:[#allocation3 + $0x8] sm:$0xff]  ;;  %v348_v5 = vld [vmem:[#allocation6 + $0x8] sm:$0xff]  ;;  %v121_v62 = vmul.f32 %v340_v1, %v338_v0  ;;  %v302_v1 = vmov 0.0  }
   0xf   :  { %v68_v6 = vmul.f32 %v346_v4, %v346_v4  ;;  %v94_v7 = vmul.f32 %v348_v5, %v348_v5 }
  0x10   :  { %185 = vrsqrt.f32 %v67_v2  ;;  %vm76_vm0 = vcmp.eq.f32.partialorder %v67_v2, inf  ;;  %vm78_vm1 = vcmp.eq.f32.partialorder %v67_v2, 0.0  ;;  %v79_v27 = vand.u32 2147483648, %v67_v2 }
  0x11   :  { %187 = vrsqrt.f32 %v93_v3  ;;  %vm102_vm2 = vcmp.eq.f32.partialorder %v93_v3, inf  ;;  %vm104_vm3 = vcmp.eq.f32.partialorder %v93_v3, 0.0  ;;  %v105_v32 = vand.u32 2147483648, %v93_v3 }
  0x12   :  { %189 = vrsqrt.f32 %v68_v6  ;;  %vm88_vm4 = vcmp.eq.f32.partialorder %v68_v6, inf  ;;  %vm90_vm5 = vcmp.eq.f32.partialorder %v68_v6, 0.0  ;;  %v91_v35 = vand.u32 2147483648, %v68_v6 }
  0x13   :  { %191 = vrsqrt.f32 %v94_v7  ;;  %vm114_vm6 = vcmp.eq.f32.partialorder %v94_v7, inf  ;;  %v117_v39 = vand.u32 2147483648, %v94_v7  ;;  %vm116_vm7 = vcmp.eq.f32.partialorder %v94_v7, 0.0 }
  0x16   :  { %v186_v8 = vpop.eup %185 }
  0x17   :  { %v188_v9 = vpop.eup %187  ;;  %v70_v10 = vmul.f32 %v186_v8, %v67_v2 }
  0x18   :  { %v190_v11 = vpop.eup %189  ;;  %v96_v12 = vmul.f32 %v188_v9, %v93_v3 }
  0x19   :  { %v192_v13 = vpop.eup %191  ;;  %v71_v14 = vmul.f32 %v186_v8, %v70_v10  ;;  %v82_v15 = vmul.f32 %v190_v11, %v68_v6 }
  0x1a   :  { %v97_v16 = vmul.f32 %v188_v9, %v96_v12  ;;  %v108_v17 = vmul.f32 %v192_v13, %v94_v7  ;;  %v64_v12 = vld [vmem:[#allocation8] sm:$0xff] }
  0x1b   :  { %v72_v18 = vmul.f32 0.5, %v71_v14  ;;  %v83_v19 = vmul.f32 %v190_v11, %v82_v15 }
  0x1c   :  { %v98_v20 = vmul.f32 0.5, %v97_v16  ;;  %v109_v21 = vmul.f32 %v192_v13, %v108_v17  ;;  %v65_v17 = vld [vmem:[#allocation8 + $0x8] sm:$0xff] }
  0x1d   :  { %v73_v22 = vsub.f32 1.5, %v72_v18  ;;  %v84_v23 = vmul.f32 0.5, %v83_v19 }
  0x1e   :  { %v99_v24 = vsub.f32 1.5, %v98_v20  ;;  %v110_v25 = vmul.f32 0.5, %v109_v21 }
  0x1f   :  { %v74_v26 = vmul.f32 %v186_v8, %v73_v22  ;;  %v85_v28 = vsub.f32 1.5, %v84_v23 }
  0x20   :  { %v100_v29 = vmul.f32 %v188_v9, %v99_v24  ;;  %v111_v30 = vsub.f32 1.5, %v110_v25  ;;  %v122_v9 = vmul.f32 %v348_v5, %v346_v4 }
  0x21   :  { %v75_v31 = vmul.f32 %v74_v26, %v67_v2  ;;  %v86_v33 = vmul.f32 %v190_v11, %v85_v28 }
  0x22   :  { %v101_v34 = vmul.f32 %v100_v29, %v93_v3  ;;  %v112_v36 = vmul.f32 %v192_v13, %v111_v30 }
  0x23   :  { %v77_v37 = vsel %vm76_vm0, %v67_v2, %v75_v31  ;;  %v87_v38 = vmul.f32 %v86_v33, %v68_v6 }
  0x24   :  { %v80_v40 = vsel %vm78_vm1, %v79_v27, %v77_v37  ;;  %v103_v41 = vsel %vm102_vm2, %v93_v3, %v101_v34  ;;  %v113_v42 = vmul.f32 %v112_v36, %v94_v7 }
  0x25   :  { %v106_v43 = vsel %vm104_vm3, %v105_v32, %v103_v41  ;;  %v89_v44 = vsel %vm88_vm4, %v68_v6, %v87_v38  ;;  %v153_v6 = vstv %s368_s0  ;;  %s167_s0 = sshll.u32 %s303_s29, 4  ;;  %s168_s0 = int_to_ptr.vmem [resolvable:$true] %s167_s0 }
  0x26   :  { %v119_v45 = vmul.f32 %v106_v43, %v80_v40  ;;  %v92_v46 = vsel %vm90_vm5, %v91_v35, %v89_v44  ;;  %v115_v47 = vsel %vm114_vm6, %v94_v7, %v113_v42 }
  0x27   :  { %v118_v48 = vsel %vm116_vm7, %v117_v39, %v115_v47 }
  0x28   :  { %193 = vrcp.f32 %v119_v45  ;;  %v120_v49 = vmul.f32 %v118_v48, %v92_v46  ;;  %v134_v52 = vand.u32 2147483648, %v119_v45  ;;  %vm128_vm8 = vweird.f32 %v119_v45 }
  0x29   :  { %v132_v55 = vand.u32 2147483647, %v119_v45 }
  0x2a   :  { %195 = vrcp.f32 %v120_v49  ;;  %v135_v58 = vor.u32 1.1754944e-38, %v134_v52  ;;  %v149_v59 = vand.u32 2147483648, %v120_v49  ;;  %vm143_vm11 = vweird.f32 %v120_v49 }
  0x2b   :  { %v147_v61 = vand.u32 2147483647, %v120_v49  ;;  %vm133_vm13 = vcmp.eq.f32.partialorder %v132_v55, 8.507059e+37 }
  0x2c   :  { %v150_v7 = vor.u32 1.1754944e-38, %v149_v59 }
  0x2d   :  { %vm148_vm15 = vcmp.eq.f32.partialorder %v147_v61, 8.507059e+37 }
  0x2e   :  { %v194_v50 = vpop.eup %193 }
  0x2f   :  { %v124_v51 = vmul.f32 %v194_v50, %v119_v45  ;;  %vm129_vm9 = vweird.f32 %v194_v50 }
  0x30   :  { %v196_v53 = vpop.eup %195  ;;  %vm130_vm10 = vmor %vm128_vm8, %vm129_vm9 }
  0x31   :  { %v125_v54 = vsub.f32 1.0, %v124_v51  ;;  %v139_v56 = vmul.f32 %v196_v53, %v120_v49  ;;  %vm144_vm12 = vweird.f32 %v196_v53 }
  0x32   :  { %vm145_vm14 = vmor %vm143_vm11, %vm144_vm12 }
  0x33   :  { %v126_v57 = vmul.f32 %v194_v50, %v125_v54  ;;  %v140_v60 = vsub.f32 1.0, %v139_v56 }
  0x35   :  { %v127_v63 = vadd.f32 %v194_v50, %v126_v57  ;;  %v141_v2 = vmul.f32 %v196_v53, %v140_v60 }
  0x37   :  { %v131_v3 = vsel %vm130_vm10, %v194_v50, %v127_v63  ;;  %v142_v10 = vadd.f32 %v196_v53, %v141_v2 }
  0x38   :  { %v136_v8 = vsel %vm133_vm13, %v135_v58, %v131_v3 }
  0x39   :  { %v137_v11 = vmul.f32 %v136_v8, %v121_v62  ;;  %v146_v13 = vsel %vm145_vm14, %v196_v53, %v142_v10 }
  0x3a   :  { %v151_v0 = vsel %vm148_vm15, %v150_v7, %v146_v13 }
  0x3b   :  { %vm154_vm0 = vcmp.gt.f32.partialorder %v137_v11, %v153_v6  ;;  %v152_v15 = vmul.f32 %v151_v0, %v122_v9 }
  0x3c   :  { %v156_v14 = vsel %vm154_vm0, 1.0, %v302_v1 }
  0x3d   :  { %v158_v16 = vmul.f32 %v156_v14, %v64_v12  ;;  %vm155_vm1 = vcmp.gt.f32.partialorder %v152_v15, %v153_v6 }
  0x3e   :  { %v157_v4 = vsel %vm155_vm1, 1.0, %v302_v1 }
  0x3f   :  { %160 = vst [vmem:[#allocation9] sm:$0xff] %v158_v16  ;;  %v159_v5 = vmul.f32 %v157_v4, %v65_v17 }
  0x41   :  { %161 = vst [vmem:[#allocation9 + $0x8] sm:$0xff] %v159_v5 }
  0x42   :  { %172 = dma.vmem_to_hbm [thread:$0]  %s168_s0, 256, %s170_s6, [#allocation5]  }
  0x43   :  { %297 = dma.done.wait [#allocation5], 256  }
  0x44   :  { %298 = vsyncadd [#allocation5], 4294967040 }
  0x45   :  { %177 = vsyncpa [#allocation4], 1 }
  0x46   :  { %178 = vsyncpa [#allocation7], 1 }
  0x47   :  { %179 = vsyncpa [#allocation5], 1 }

</bundles_post_ra>
